<compile_context>
chip_gen: v7x
topology: tpu7x:2x2x1
jax: 0.10.0
libtpu: 0.0.40
codegen_flags: <defaults>
</compile_context>

<pallas_src>
import functools

import jax
import jax.numpy as jnp
from jax.experimental import pallas as pl
from jax.experimental.pallas import tpu as pltpu


def _gct_l2_kernel(x_ref, alpha_ref, gamma_ref, beta_ref, o_ref, *, epsilon):
    x = x_ref[...]                                    # (TN, C, H, TW)
    xf = x.astype(jnp.float32)
    alpha = alpha_ref[...].astype(jnp.float32)        # (C, 1)
    gamma = gamma_ref[...].astype(jnp.float32)        # (C, 1)
    beta = beta_ref[...].astype(jnp.float32)          # (C, 1)

    # sum_{C,H} x^2: reduce over C first (major axis -> pure VPU adds),
    # then one cross-sublane (XLU) reduce over H per tile.
    sq = xf * xf                                      # (TN, C, H, TW)
    s_c = jnp.sum(sq, axis=1)                         # (TN, H, TW)
    s_ch = jnp.sum(s_c, axis=1, keepdims=True)        # (TN, 1, TW)

    # Gate math on (TN, C, TW): C on sublanes, W on lanes.
    embedding = jnp.sqrt(s_ch + epsilon) * alpha      # (TN, C, TW)
    mean_e2 = jnp.mean(embedding * embedding, axis=1, keepdims=True)  # (TN, 1, TW)
    norm = gamma * jax.lax.rsqrt(mean_e2 + epsilon)   # (TN, C, TW)
    gate = 1.0 + jnp.tanh(embedding * norm + beta)    # (TN, C, TW)

    # Broadcast the gate over H and store in the output dtype.
    o_ref[...] = (xf * gate[:, :, None, :]).astype(o_ref.dtype)


def _choose_tiles(N, C, H, W, itemsize, block_budget_bytes=2 * 1024 * 1024):
    """Pick (TN, TW): batch packing + 128-aligned W tiling under a VMEM budget."""
    col_bytes = C * H * itemsize  # bytes per unit of W for one batch element
    if W % 128 == 0 and col_bytes * W > block_budget_bytes:
        # Largest multiple of 128 that divides W and keeps the block in budget.
        tw = 128
        for cand in range(W, 127, -128):
            if W % cand == 0 and col_bytes * cand <= block_budget_bytes:
                tw = cand
                break
    else:
        tw = W  # full width (covers W < 128 and ragged W)

    block_bytes = col_bytes * tw
    tn = 1
    for cand in range(N, 0, -1):
        if N % cand == 0 and cand * block_bytes <= block_budget_bytes:
            tn = cand
            break
    return tn, tw


def gct_forward(x, alpha, gamma, beta, *, epsilon=1e-5):
    """GCT (l2 mode) forward.  x: (N, C, H, W); alpha/gamma/beta: (1, C, 1, 1)."""
    N, C, H, W = x.shape
    tn, tw = _choose_tiles(N, C, H, W, x.dtype.itemsize)

    # Lane/sublane-friendly parameter layout: (C, 1).
    alpha2 = alpha.reshape(C, 1)
    gamma2 = gamma.reshape(C, 1)
    beta2 = beta.reshape(C, 1)

    kernel = functools.partial(_gct_l2_kernel, epsilon=epsilon)

    x_spec = pl.BlockSpec((tn, C, H, tw), lambda n, w: (n, 0, 0, w))
    param_spec = pl.BlockSpec((C, 1), lambda n, w: (0, 0))

    return pl.pallas_call(
        kernel,
        out_shape=jax.ShapeDtypeStruct((N, C, H, W), x.dtype),
        grid=(N // tn, W // tw),
        in_specs=[x_spec, param_spec, param_spec, param_spec],
        out_specs=x_spec,
        compiler_params=pltpu.CompilerParams(
            dimension_semantics=("parallel", "parallel"),
            vmem_limit_bytes=32 * 1024 * 1024,
        ),
    )(x, alpha2, gamma2, beta2)


def gct_reference(x, alpha, gamma, beta, epsilon=1e-5):
    """Pure-JAX reference mirroring the PyTorch forward (mode='l2')."""
    embedding = jnp.sqrt(jnp.sum(x ** 2, axis=(1, 2), keepdims=True) + epsilon) * alpha
    norm = gamma / jnp.sqrt(jnp.mean(embedding ** 2, axis=1, keepdims=True) + epsilon)
    gate = 1.0 + jnp.tanh(embedding * norm + beta)
    return x * gate


def _run_case(key, shape, dtype=jnp.float32, atol=1e-5, rtol=1e-5):
    N, C, H, W = shape
    kx, ka, kg, kb = jax.random.split(key, 4)
    x = jax.random.normal(kx, (N, C, H, W), dtype=dtype)

    # Module __init__ shapes: alpha=(1,C,1,1) ones, gamma/beta=(1,C,1,1) zeros.
    # Add small deterministic perturbations so the gate is non-trivial.
    alpha = jnp.ones((1, C, 1, 1), jnp.float32) + 0.1 * jax.random.normal(ka, (1, C, 1, 1), jnp.float32)
    gamma = jnp.zeros((1, C, 1, 1), jnp.float32) + 0.5 * jax.random.normal(kg, (1, C, 1, 1), jnp.float32)
    beta = jnp.zeros((1, C, 1, 1), jnp.float32) + 0.1 * jax.random.normal(kb, (1, C, 1, 1), jnp.float32)

    out = jax.block_until_ready(gct_forward(x, alpha, gamma, beta))
    ref = gct_reference(x.astype(jnp.float32), alpha, gamma, beta).astype(dtype)

    assert out.shape == x.shape and out.dtype == x.dtype
    assert jnp.allclose(out.astype(jnp.float32), ref.astype(jnp.float32),
                        atol=atol, rtol=rtol), f"mismatch vs reference for shape {shape}"


if __name__ == "__main__":
    key = jax.random.PRNGKey(0)
    k1, k2 = jax.random.split(key, 2)

    # Small module-consistent shape (primary check).
    _run_case(k1, (2, 4, 16, 16))
    # Lane-full width (W = 128) exercising batch packing with full-lane stores.
    _run_case(k2, (2, 8, 16, 128))

    print("KERNEL_OK")
</pallas_src>

<mosaic_0001>
module attributes {stable_mosaic.version = 11 : i64} {
  func.func @_gct_l2_kernel(%arg0: i32, %arg1: i32, %arg2: memref<2x4x16x16xf32, #tpu.memory_space<vmem>>, %arg3: memref<4x1xf32, #tpu.memory_space<vmem>>, %arg4: memref<4x1xf32, #tpu.memory_space<vmem>>, %arg5: memref<4x1xf32, #tpu.memory_space<vmem>>, %arg6: memref<2x4x16x16xf32, #tpu.memory_space<vmem>>) attributes {dimension_semantics = [#tpu.dimension_semantics<parallel>, #tpu.dimension_semantics<parallel>], iteration_bounds = array<i64: 1, 1>, scalar_prefetch = 0 : i64, scratch_operands = 0 : i64, tpu.core_type = #tpu.core_type<tc>, window_params = [{transform_indices = @transform_0, window_bounds = array<i64: 2, 4, 16, 16>}, {pipeline_mode = #tpu.pipeline_mode<synchronous>, transform_indices = @transform_1, window_bounds = array<i64: 4, 1>}, {pipeline_mode = #tpu.pipeline_mode<synchronous>, transform_indices = @transform_2, window_bounds = array<i64: 4, 1>}, {pipeline_mode = #tpu.pipeline_mode<synchronous>, transform_indices = @transform_3, window_bounds = array<i64: 4, 1>}, {transform_indices = @transform_4, window_bounds = array<i64: 2, 4, 16, 16>}]} {
    %c0 = arith.constant 0 : index
    %c0_0 = arith.constant 0 : index
    %c0_1 = arith.constant 0 : index
    %c0_2 = arith.constant 0 : index
    %0 = vector.load %arg2[%c0, %c0_0, %c0_1, %c0_2] : memref<2x4x16x16xf32, #tpu.memory_space<vmem>>, vector<2x4x16x16xf32>
    %c0_3 = arith.constant 0 : index
    %c0_4 = arith.constant 0 : index
    %1 = vector.load %arg3[%c0_3, %c0_4] : memref<4x1xf32, #tpu.memory_space<vmem>>, vector<4x1xf32>
    %c0_5 = arith.constant 0 : index
    %c0_6 = arith.constant 0 : index
    %2 = vector.load %arg4[%c0_5, %c0_6] : memref<4x1xf32, #tpu.memory_space<vmem>>, vector<4x1xf32>
    %c0_7 = arith.constant 0 : index
    %c0_8 = arith.constant 0 : index
    %3 = vector.load %arg5[%c0_7, %c0_8] : memref<4x1xf32, #tpu.memory_space<vmem>>, vector<4x1xf32>
    %4 = arith.mulf %0, %0 : vector<2x4x16x16xf32>
    %cst = arith.constant dense<0.000000e+00> : vector<2x16x16xf32>
    %5 = vector.multi_reduction <add>, %4, %cst [1] : vector<2x4x16x16xf32> to vector<2x16x16xf32>
    %cst_9 = arith.constant dense<0.000000e+00> : vector<2x16xf32>
    %6 = vector.multi_reduction <add>, %5, %cst_9 [1] : vector<2x16x16xf32> to vector<2x16xf32>
    %7 = vector.shape_cast %6 : vector<2x16xf32> to vector<2x1x16xf32>
    %cst_10 = arith.constant 9.99999974E-6 : f32
    %8 = vector.broadcast %cst_10 : f32 to vector<2x1x16xf32>
    %9 = arith.addf %7, %8 : vector<2x1x16xf32>
    %10 = math.sqrt %9 : vector<2x1x16xf32>
    %11 = vector.shape_cast %1 : vector<4x1xf32> to vector<1x4x1xf32>
    %12 = vector.broadcast %10 : vector<2x1x16xf32> to vector<2x4x16xf32>
    %13 = vector.broadcast %11 : vector<1x4x1xf32> to vector<2x4x16xf32>
    %14 = arith.mulf %12, %13 : vector<2x4x16xf32>
    %15 = arith.mulf %14, %14 : vector<2x4x16xf32>
    %cst_11 = arith.constant dense<0.000000e+00> : vector<2x16xf32>
    %16 = vector.multi_reduction <add>, %15, %cst_11 [1] : vector<2x4x16xf32> to vector<2x16xf32>
    %17 = vector.shape_cast %16 : vector<2x16xf32> to vector<2x1x16xf32>
    %cst_12 = arith.constant 4.000000e+00 : f32
    %18 = vector.broadcast %cst_12 : f32 to vector<2x1x16xf32>
    %19 = arith.divf %17, %18 : vector<2x1x16xf32>
    %cst_13 = arith.constant 9.99999974E-6 : f32
    %20 = vector.broadcast %cst_13 : f32 to vector<2x1x16xf32>
    %21 = arith.addf %19, %20 : vector<2x1x16xf32>
    %22 = math.rsqrt %21 : vector<2x1x16xf32>
    %23 = vector.shape_cast %2 : vector<4x1xf32> to vector<1x4x1xf32>
    %24 = vector.broadcast %23 : vector<1x4x1xf32> to vector<2x4x16xf32>
    %25 = vector.broadcast %22 : vector<2x1x16xf32> to vector<2x4x16xf32>
    %26 = arith.mulf %24, %25 : vector<2x4x16xf32>
    %27 = arith.mulf %14, %26 : vector<2x4x16xf32>
    %28 = vector.shape_cast %3 : vector<4x1xf32> to vector<1x4x1xf32>
    %29 = vector.broadcast %28 : vector<1x4x1xf32> to vector<2x4x16xf32>
    %30 = arith.addf %27, %29 : vector<2x4x16xf32>
    %31 = math.tanh %30 : vector<2x4x16xf32>
    %cst_14 = arith.constant 1.000000e+00 : f32
    %32 = vector.broadcast %cst_14 : f32 to vector<2x4x16xf32>
    %33 = arith.addf %32, %31 : vector<2x4x16xf32>
    %34 = vector.shape_cast %33 : vector<2x4x16xf32> to vector<2x4x1x16xf32>
    %35 = vector.broadcast %34 : vector<2x4x1x16xf32> to vector<2x4x16x16xf32>
    %36 = arith.mulf %0, %35 : vector<2x4x16x16xf32>
    %c0_15 = arith.constant 0 : index
    %c0_16 = arith.constant 0 : index
    %c0_17 = arith.constant 0 : index
    %c0_18 = arith.constant 0 : index
    %37 = vector.load %arg6[%c0_15, %c0_16, %c0_17, %c0_18] : memref<2x4x16x16xf32, #tpu.memory_space<vmem>>, vector<2x4x16x16xf32>
    tpu.vector_store %arg6[%c0_15, %c0_16, %c0_17, %c0_18], %36 {strides = array<i32>} : memref<2x4x16x16xf32, #tpu.memory_space<vmem>>, vector<2x4x16x16xf32>,
    return
  }
  func.func @transform_0(%arg0: i32, %arg1: i32) -> (i32, i32, i32, i32) {
    %c0_i32 = arith.constant 0 : i32
    %c0_i32_0 = arith.constant 0 : i32
    %c0_i32_1 = arith.constant 0 : i32
    return %arg0, %c0_i32, %c0_i32_0, %arg1 : i32, i32, i32, i32
  }
  func.func @transform_1(%arg0: i32, %arg1: i32) -> (i32, i32) {
    %c0_i32 = arith.constant 0 : i32
    %c0_i32_0 = arith.constant 0 : i32
    %c0_i32_1 = arith.constant 0 : i32
    return %c0_i32, %c0_i32_0 : i32, i32
  }
  func.func @transform_2(%arg0: i32, %arg1: i32) -> (i32, i32) {
    %c0_i32 = arith.constant 0 : i32
    %c0_i32_0 = arith.constant 0 : i32
    %c0_i32_1 = arith.constant 0 : i32
    return %c0_i32, %c0_i32_0 : i32, i32
  }
  func.func @transform_3(%arg0: i32, %arg1: i32) -> (i32, i32) {
    %c0_i32 = arith.constant 0 : i32
    %c0_i32_0 = arith.constant 0 : i32
    %c0_i32_1 = arith.constant 0 : i32
    return %c0_i32, %c0_i32_0 : i32, i32
  }
  func.func @transform_4(%arg0: i32, %arg1: i32) -> (i32, i32, i32, i32) {
    %c0_i32 = arith.constant 0 : i32
    %c0_i32_0 = arith.constant 0 : i32
    %c0_i32_1 = arith.constant 0 : i32
    return %arg0, %c0_i32, %c0_i32_0, %arg1 : i32, i32, i32, i32
  }
}

</mosaic_0001>

<bundles_post_ra>
// kernel: tpu_custom_call.1
= control target key start
LH: loop header
LB: loop body
LE: loop exit
PB: predicated region body
PF: predicated region fallthrough
CT: control target
= control target key end

     0   :  { %9 = vsyncpa [#allocation3], 0  ;;  %s574_s0 = inlined_call_operand.hbm [shape: f32[2,4,16,16], index: 0, kind: input, shape index: {}]   ;;  %s575_s1 = inlined_call_operand.vmem [shape: f32[4,1], index: 1, kind: input, shape index: {}]   ;;  %s576_s2 = inlined_call_operand.vmem [shape: f32[4,1], index: 2, kind: input, shape index: {}]   ;;  %s577_s3 = inlined_call_operand.vmem [shape: f32[4,1], index: 3, kind: input, shape index: {}]   ;;  %s578_s4 = inlined_call_operand.hbm [shape: f32[2,4,16,16], index: 4, kind: output, shape index: {}]  }
   0x1   :  { %10 = vsyncpa [#allocation4], 0  ;;  %s388_s15 = smov [#allocation2]   ;;  %s340_s19 = scalar_lea.hbm %s574_s0, 2048 }
   0x2   :  { %s16_s16 = sshll.u32 %s388_s15, 4  ;;  %p341_p0 = scmp.ne.s32.totalorder %s574_s0, %s340_s19  ;;  %s17_s16 = int_to_ptr.vmem [resolvable:$true] %s16_s16 }
   0x3   :  { %p344_p1 = scmp.lt.u32.totalorder %s340_s19, %s574_s0 }
   0x5   :  { %p346_p2 = pnand %p344_p1, %p341_p0 }
   0x7   :  { %349 = shalt.err (!%p346_p2)
}
   0x8   :  { %s350_s24 = scalar_lea.vmem %s17_s16, 2048  ;;  %p355_p4 = scmp.lt.s32.totalorder %s17_s16, %s17_s16 }
   0x9   :  { %p351_p3 = scmp.ne.s32.totalorder %s17_s16, %s350_s24  ;;  %p356_p5 = scmp.lt.s32.totalorder %s350_s24, %s350_s24 }
   0xb   :  { %p357_p6 = por %p356_p5, %p355_p4 }
   0xd   :  { %p358_p7 = pnand %p357_p6, %p351_p3 }
   0xf   :  { %361 = shalt.err (!%p358_p7)
}
  0x10   :  { %s389_s25 = smov 128   ;;  %s390_s26 = smov 8  }
  0x11   :  { %22 = dma.hbm_to_vmem [thread:$0]  %s574_s0, 2048, %s17_s16, [#allocation3], %s389_s25, %s389_s25, %s390_s26  }
  0x12   :  { %384 = dma.done.wait [#allocation3], 2048  }
  0x13   :  { %385 = vsyncadd [#allocation3], 4294965248  ;;  %v391_v0 = vmov 0   ;;  %v48_v1 = vld [vmem:[%s575_s1] sm:$0xf]  ;;  %v445_v5 = vld [vmem:[#allocation2 + $0x10] sm:$0xff] }
  0x14   :  { %326 = vset.pattern.permute.xlu0 %v391_v0  ;;  %327 = vset.pattern.permute.xlu1 %v391_v0  ;;  %v50_v2 = vld [vmem:[%s577_s3] sm:$0xf]  ;;  %v447_v6 = vld [vmem:[#allocation2 + $0x8] sm:$0xff]  ;;  %v449_v7 = vld [vmem:[#allocation2 + $0x18] sm:$0xff]  ;;  %v53_v13 = vmul.f32 %v445_v5, %v445_v5  ;;  %vm67_vm0 = vcmask 130048   ;;  %vm139_vm5 = vcmask 125952  }
  0x15   :  { %132 = vperm.xlu0 %326, %v48_v1   ;;  %172 = vperm.xlu1 %327, %v50_v2   ;;  %v49_v3 = vld [vmem:[%s576_s2] sm:$0xf]  ;;  %v453_v9 = vld [vmem:[#allocation2 + $0x48] sm:$0xff]  ;;  %v455_v10 = vld [vmem:[#allocation2 + $0x50] sm:$0xff]  ;;  %v52_v16 = vmul.f32 %v447_v6, %v447_v6  ;;  %v54_v17 = vmul.f32 %v449_v7, %v449_v7  ;;  %s393_s0 = smov [#allocation5]  }
  0x16   :  { %v443_v4 = vld [vmem:[#allocation2] sm:$0xff]  ;;  %v457_v11 = vld [vmem:[#allocation2 + $0x58] sm:$0xff]  ;;  %v465_v15 = vld [vmem:[#allocation2 + $0x28] sm:$0xff]  ;;  %v60_v21 = vmul.f32 %v453_v9, %v453_v9  ;;  %v61_v22 = vmul.f32 %v455_v10, %v455_v10  ;;  %v69_v27 = vsel %vm67_vm0, %v53_v13, 0.0  ;;  %s308_s1 = sshll.u32 %s393_s0, 4  ;;  %s309_s1 = int_to_ptr.vmem [resolvable:$true] %s308_s1 }
  0x17   :  { %v451_v8 = vld [vmem:[#allocation2 + $0x40] sm:$0xff]  ;;  %v51_v12 = vmul.f32 %v443_v4, %v443_v4  ;;  %v473_v19 = vld [vmem:[#allocation2 + $0x68] sm:$0xff]  ;;  %v62_v23 = vmul.f32 %v457_v11, %v457_v11  ;;  %v56_v25 = vmul.f32 %v465_v15, %v465_v15  ;;  %v489_v28 = vld [vmem:[#allocation2 + $0x30] sm:$0xff]  ;;  %v75_v32 = vsel %vm67_vm0, %v52_v16, 0.0  ;;  %s362_s2 = scalar_lea.vmem %s309_s1, 2048  ;;  %p367_p9 = scmp.lt.s32.totalorder %s309_s1, %s309_s1 }
  0x18   :  { %v463_v14 = vld [vmem:[#allocation2 + $0x20] sm:$0xff]  ;;  %v59_v20 = vmul.f32 %v451_v8, %v451_v8  ;;  %v491_v29 = vld [vmem:[#allocation2 + $0x38] sm:$0xff]  ;;  %v64_v31 = vmul.f32 %v473_v19, %v473_v19  ;;  %v76_v33 = vsel %vm67_vm0, %v54_v17, 0.0  ;;  %v83_v35 = vsel %vm67_vm0, %v61_v22, 0.0  ;;  %v503_v38 = vld [vmem:[#allocation2 + $0x70] sm:$0xff]  ;;  %p363_p8 = scmp.ne.s32.totalorder %s309_s1, %s362_s2  ;;  %p368_p10 = scmp.lt.s32.totalorder %s362_s2, %s362_s2 }
  0x19   :  { %163 = vperm.xlu0 %326, %v49_v3   ;;  %v471_v18 = vld [vmem:[#allocation2 + $0x60] sm:$0xff]  ;;  %v55_v24 = vmul.f32 %v463_v14, %v463_v14  ;;  %v68_v26 = vsel %vm67_vm0, %v51_v12, 0.0  ;;  %v89_v36 = vsel %vm67_vm0, %v60_v21, 0.0  ;;  %v90_v37 = vsel %vm67_vm0, %v62_v23, 0.0  ;;  %v505_v39 = vld [vmem:[#allocation2 + $0x78] sm:$0xff] }
  0x1a   :  { %v63_v30 = vmul.f32 %v471_v18, %v471_v18  ;;  %v82_v34 = vsel %vm67_vm0, %v59_v20, 0.0  ;;  %v57_v40 = vmul.f32 %v489_v28, %v489_v28  ;;  %v58_v41 = vmul.f32 %v491_v29, %v491_v29  ;;  %p369_p11 = por %p368_p10, %p367_p9 }
  0x1b   :  { %v70_v42 = vadd.f32 %v69_v27, %v68_v26  ;;  %v77_v43 = vadd.f32 %v76_v33, %v75_v32  ;;  %v71_v44 = vsel %vm67_vm0, %v55_v24, 0.0  ;;  %v78_v45 = vsel %vm67_vm0, %v56_v25, 0.0 }
  0x1c   :  { %v84_v46 = vadd.f32 %v83_v35, %v82_v34  ;;  %v91_v47 = vadd.f32 %v90_v37, %v89_v36  ;;  %v65_v48 = vmul.f32 %v503_v38, %v503_v38  ;;  %v66_v49 = vmul.f32 %v505_v39, %v505_v39  ;;  %p370_p12 = pnand %p369_p11, %p363_p8 }
  0x1d   :  { %v85_v50 = vsel %vm67_vm0, %v63_v30, 0.0  ;;  %v92_v51 = vsel %vm67_vm0, %v64_v31, 0.0  ;;  %v72_v52 = vadd.f32 %v71_v44, %v70_v42  ;;  %v79_v53 = vadd.f32 %v78_v45, %v77_v43 }
  0x1e   :  { %v73_v54 = vsel %vm67_vm0, %v57_v40, 0.0  ;;  %v80_v55 = vsel %vm67_vm0, %v58_v41, 0.0  ;;  %v86_v56 = vadd.f32 %v85_v50, %v84_v46  ;;  %v93_v57 = vadd.f32 %v92_v51, %v91_v47 }
  0x1f   :  { %v87_v58 = vsel %vm67_vm0, %v65_v48, 0.0  ;;  %v94_v59 = vsel %vm67_vm0, %v66_v49, 0.0  ;;  %v74_v60 = vadd.f32 %v73_v54, %v72_v52  ;;  %v81_v61 = vadd.f32 %v80_v55, %v79_v53 }
  0x20   :  { %v88_v62 = vadd.f32 %v87_v58, %v86_v56  ;;  %v95_v63 = vadd.f32 %v94_v59, %v93_v57 }
  0x21   :  { %v96_v0 = vsel %vm67_vm0, %v74_v60, 0.0  ;;  %v97_v1 = vsel %vm67_vm0, %v81_v61, 0.0 }
  0x22   :  { %v105_v2 = vsel %vm67_vm0, %v88_v62, 0.0  ;;  %v106_v3 = vsel %vm67_vm0, %v95_v63, 0.0  ;;  %v98_v12 = vadd.f32 %v97_v1, %v96_v0 }
  0x23   :  { %v107_v13 = vadd.f32 %v106_v3, %v105_v2 }
  0x24   :  { %v99_v16 = vrot.slane %v98_v12, 4 }
  0x25   :  { %v108_v17 = vrot.slane %v107_v13, 4 }
  0x26   :  { %v100_v20 = vadd.f32 %v99_v16, %v98_v12 }
  0x27   :  { %v109_v21 = vadd.f32 %v108_v17, %v107_v13 }
  0x28   :  { %v101_v22 = vrot.slane %v100_v20, 2 }
  0x29   :  { %v110_v23 = vrot.slane %v109_v21, 2 }
  0x2a   :  { %v102_v24 = vadd.f32 %v101_v22, %v100_v20 }
  0x2b   :  { %v111_v25 = vadd.f32 %v110_v23, %v109_v21 }
  0x2c   :  { %v103_v26 = vrot.slane %v102_v24, 1 }
  0x2d   :  { %v112_v27 = vrot.slane %v111_v25, 1 }
  0x2e   :  { %v104_v30 = vadd.f32 %v103_v26, %v102_v24 }
  0x2f   :  { %v113_v31 = vadd.f32 %v112_v27, %v111_v25  ;;  %v392_v27 = vmov 1966171168  }
  0x30   :  { %v114_v32 = vadd.f32 1e-05, %v104_v30  ;;  %v184_v30 = vunpack.c.l.s4 %v392_v27 }
  0x31   :  { %v115_v33 = vadd.f32 1e-05, %v113_v31  ;;  %v186_v31 = vlaneseq }
  0x32   :  { %328 = vrsqrt.f32 %v114_v32  ;;  %vm118_vm1 = vcmp.eq.f32.partialorder %v114_v32, inf  ;;  %v121_v40 = vand.u32 2147483648, %v114_v32  ;;  %vm120_vm3 = vcmp.eq.f32.partialorder %v114_v32, 0.0 }
  0x33   :  { %330 = vrsqrt.f32 %v115_v33  ;;  %vm125_vm2 = vcmp.eq.f32.partialorder %v115_v33, inf  ;;  %v128_v41 = vand.u32 2147483648, %v115_v33  ;;  %vm127_vm4 = vcmp.eq.f32.partialorder %v115_v33, 0.0 }
  0x3c   :  { %v329_v34 = vpop.eup %328 }
  0x3d   :  { %v331_v35 = vpop.eup %330  ;;  %v117_v36 = vmul.f32 %v329_v34, %v114_v32 }
  0x3e   :  { %v124_v37 = vmul.f32 %v331_v35, %v115_v33 }
  0x3f   :  { %v119_v42 = vsel %vm118_vm1, %v114_v32, %v117_v36  ;;  %v185_v32 = vunpack.c.0.s8 %v184_v30 }
  0x40   :  { %v126_v43 = vsel %vm125_vm2, %v115_v33, %v124_v37  ;;  %v122_v44 = vsel %vm120_vm3, %v121_v40, %v119_v42  ;;  %v187_v33 = vshrl.u32 %v186_v31, 7 }
  0x41   :  { %v129_v45 = vsel %vm127_vm4, %v128_v41, %v126_v43 }
  0x42   :  { %v188_v34 = vsub.s32 %v185_v32, %v187_v33  ;;  %v233_v41 = vsub.s32 0, %v187_v33 }
  0x94   :  { %v133_v46 = vpop.permute.xlu0 %132  ;;  %v173_v22 = vpop.permute.xlu1 %172 }
  0x95   :  { %v135_v47 = vmul.f32 %v133_v46, %v122_v44  ;;  %v136_v48 = vmul.f32 %v133_v46, %v129_v45 }
  0x97   :  { %v137_v49 = vmul.f32 %v135_v47, %v135_v47  ;;  %v138_v50 = vmul.f32 %v136_v48, %v136_v48 }
  0x98   :  { %v164_v16 = vpop.permute.xlu0 %163 }
  0x99   :  { %v140_v51 = vsel %vm139_vm5, %v137_v49, 0.0  ;;  %v147_v52 = vsel %vm139_vm5, %v138_v50, 0.0 }
  0x9a   :  { %v141_v53 = vrot.slane %v140_v51, 4  ;;  %v148_v54 = vrot.slane %v147_v52, 4 }
  0x9c   :  { %v142_v55 = vadd.f32 %v141_v53, %v140_v51  ;;  %v149_v56 = vadd.f32 %v148_v54, %v147_v52 }
  0x9e   :  { %v143_v57 = vrot.slane %v142_v55, 2  ;;  %v150_v58 = vrot.slane %v149_v56, 2 }
  0xa0   :  { %v144_v59 = vadd.f32 %v143_v57, %v142_v55  ;;  %v151_v60 = vadd.f32 %v150_v58, %v149_v56 }
  0xa2   :  { %v145_v61 = vrot.slane %v144_v59, 1  ;;  %v152_v62 = vrot.slane %v151_v60, 1 }
  0xa4   :  { %v146_v63 = vadd.f32 %v145_v61, %v144_v59  ;;  %v153_v0 = vadd.f32 %v152_v62, %v151_v60 }
  0xa6   :  { %v155_v1 = vmul.f32 0.25, %v146_v63  ;;  %v156_v2 = vmul.f32 0.25, %v153_v0 }
  0xa8   :  { %v157_v3 = vadd.f32 1e-05, %v155_v1  ;;  %v158_v12 = vadd.f32 1e-05, %v156_v2 }
  0xaa   :  { %332 = vrsqrt.f32 %v157_v3 }
  0xab   :  { %334 = vrsqrt.f32 %v158_v12 }
  0xb4   :  { %v333_v13 = vpop.eup %332 }
  0xb5   :  { %v335_v17 = vpop.eup %334  ;;  %v166_v20 = vmul.f32 %v333_v13, %v164_v16 }
  0xb6   :  { %v167_v21 = vmul.f32 %v335_v17, %v164_v16 }
  0xb7   :  { %v168_v23 = vmul.f32 %v166_v20, %v135_v47 }
  0xb8   :  { %v169_v24 = vmul.f32 %v167_v21, %v136_v48 }
  0xb9   :  { %v175_v25 = vadd.f32 %v173_v22, %v168_v23 }
  0xba   :  { %v176_v26 = vadd.f32 %v173_v22, %v169_v24 }
  0xbb   :  { %336 = vtanh.f32 %v175_v25 }
  0xbc   :  { %338 = vtanh.f32 %v176_v26 }
  0xc5   :  { %v337_v35 = vpop.eup %336 }
  0xc6   :  { %v339_v36 = vpop.eup %338  ;;  %v179_v37 = vadd.f32 1.0, %v337_v35 }
  0xc7   :  { %v180_v40 = vadd.f32 1.0, %v339_v36 }
  0xc8   :  { %v189_v42 = vrot.slane %v179_v37, %v188_v34 }
  0xc9   :  { %v213_v43 = vrot.slane %v180_v40, %v188_v34 }
  0xca   :  { %v190_v44 = vcombine.high %v189_v42, %v189_v42  ;;  %v197_v45 = vrot.slane %v189_v42, %v188_v34 }
  0xcb   :  { %v214_v46 = vcombine.high %v213_v43, %v213_v43  ;;  %v221_v47 = vrot.slane %v213_v43, %v188_v34 }
  0xcc   :  { %v204_v48 = vrot.slane %v190_v44, %v188_v34  ;;  %v205_v49 = vcombine.high %v197_v45, %v197_v45  ;;  %v234_v50 = vrot.slane %v197_v45, %v233_v41 }
  0xcd   :  { %v228_v51 = vrot.slane %v214_v46, %v188_v34  ;;  %v229_v52 = vcombine.high %v221_v47, %v221_v47  ;;  %v250_v53 = vrot.slane %v221_v47, %v233_v41 }
  0xce   :  { %v206_v54 = vcombine.high %v204_v48, %v204_v48  ;;  %v238_v55 = vrot.slane %v204_v48, %v233_v41  ;;  %v242_v56 = vrot.slane %v205_v49, %v233_v41  ;;  %v271_v57 = vmul.f32 %v234_v50, %v443_v4 }
  0xcf   :  { %v230_v58 = vcombine.high %v228_v51, %v228_v51  ;;  %v254_v59 = vrot.slane %v228_v51, %v233_v41  ;;  %v258_v60 = vrot.slane %v229_v52, %v233_v41  ;;  %v272_v61 = vmul.f32 %v234_v50, %v447_v6 }
  0xd0   :  { %v246_v62 = vrot.slane %v206_v54, %v233_v41  ;;  %v273_v63 = vmul.f32 %v238_v55, %v445_v5  ;;  %v274_v0 = vmul.f32 %v238_v55, %v449_v7  ;;  %v275_v1 = vmul.f32 %v242_v56, %v463_v14  ;;  %287 = vst.msk [vmem:[#allocation5] sm:$0xff] %vm67_vm0, %v271_v57 }
  0xd1   :  { %v262_v2 = vrot.slane %v230_v58, %v233_v41  ;;  %v276_v3 = vmul.f32 %v242_v56, %v465_v15  ;;  %v279_v4 = vmul.f32 %v250_v53, %v451_v8  ;;  %v280_v12 = vmul.f32 %v250_v53, %v453_v9  ;;  %288 = vst.msk [vmem:[#allocation5 + $0x8] sm:$0xff] %vm67_vm0, %v272_v61 }
  0xd2   :  { %v277_v6 = vmul.f32 %v246_v62, %v489_v28  ;;  %v278_v5 = vmul.f32 %v246_v62, %v491_v29  ;;  %v281_v7 = vmul.f32 %v254_v59, %v455_v10  ;;  %v282_v14 = vmul.f32 %v254_v59, %v457_v11  ;;  %289 = vst.msk [vmem:[#allocation5 + $0x10] sm:$0xff] %vm67_vm0, %v273_v63 }
  0xd3   :  { %290 = vst.msk [vmem:[#allocation5 + $0x18] sm:$0xff] %vm67_vm0, %v274_v0  ;;  %291 = vst.msk [vmem:[#allocation5 + $0x20] sm:$0xff] %vm67_vm0, %v275_v1  ;;  %v283_v8 = vmul.f32 %v258_v60, %v471_v18  ;;  %v284_v9 = vmul.f32 %v258_v60, %v473_v19  ;;  %v285_v15 = vmul.f32 %v262_v2, %v503_v38 }
  0xd4   :  { %v286_v28 = vmul.f32 %v262_v2, %v505_v39  ;;  %292 = vst.msk [vmem:[#allocation5 + $0x28] sm:$0xff] %vm67_vm0, %v276_v3  ;;  %295 = vst.msk [vmem:[#allocation5 + $0x40] sm:$0xff] %vm67_vm0, %v279_v4 }
  0xd5   :  { %296 = vst.msk [vmem:[#allocation5 + $0x48] sm:$0xff] %vm67_vm0, %v280_v12  ;;  %293 = vst.msk [vmem:[#allocation5 + $0x30] sm:$0xff] %vm67_vm0, %v277_v6 }
  0xd6   :  { %294 = vst.msk [vmem:[#allocation5 + $0x38] sm:$0xff] %vm67_vm0, %v278_v5  ;;  %297 = vst.msk [vmem:[#allocation5 + $0x50] sm:$0xff] %vm67_vm0, %v281_v7 }
  0xd7   :  { %298 = vst.msk [vmem:[#allocation5 + $0x58] sm:$0xff] %vm67_vm0, %v282_v14  ;;  %299 = vst.msk [vmem:[#allocation5 + $0x60] sm:$0xff] %vm67_vm0, %v283_v8 }
  0xd8   :  { %300 = vst.msk [vmem:[#allocation5 + $0x68] sm:$0xff] %vm67_vm0, %v284_v9  ;;  %301 = vst.msk [vmem:[#allocation5 + $0x70] sm:$0xff] %vm67_vm0, %v285_v15 }
  0xd9   :  { %302 = vst.msk [vmem:[#allocation5 + $0x78] sm:$0xff] %vm67_vm0, %v286_v28 }
  0xda   :  { %373 = shalt.err (!%p370_p12)
}
  0xdb   :  { %s374_s10 = scalar_lea.hbm %s578_s4, 2048 }
  0xdc   :  { %p375_p13 = scmp.ne.s32.totalorder %s578_s4, %s374_s10  ;;  %p378_p0 = scmp.lt.u32.totalorder %s374_s10, %s578_s4 }
  0xde   :  { %p380_p1 = pnand %p378_p0, %p375_p13 }
  0xe0   :  { %383 = shalt.err (!%p380_p1)
}
  0xe1   :  { %314 = dma.vmem_to_hbm [thread:$0]  %s309_s1, 2048, %s578_s4, [#allocation4], %s389_s25, %s389_s25, %s390_s26  }
  0xe2   :  { %386 = dma.done.wait [#allocation4], 2048  }
  0xe3   :  { %387 = vsyncadd [#allocation4], 4294965248 }
  0xe4   :  { %318 = vsyncpa [#allocation3], 1 }
  0xe5   :  { %319 = vsyncpa [#allocation4], 1 }

</bundles_post_ra>
